<compile_context>
chip_gen: v6e
topology: v6e:2x2x1
jax: 0.10.0
libtpu: 0.0.40
codegen_flags: <defaults>
</compile_context>

<pallas_src>
import math
import jax
import jax.numpy as jnp
from jax.experimental import pallas as pl
from jax.experimental.pallas import tpu as pltpu

# ----- config (small, consistent with the module) -----
B = 2          # batch
S = 8          # seq length
D_MODEL = 32   # config.d_model
N_HEADS = 4    # config.num_heads
D_KV = 8       # config.d_kv
INNER = N_HEADS * D_KV
NUM_BUCKETS = 32
MAX_DISTANCE = 128
EPS = 1e-6
IS_DECODER = False  # encoder self-attention -> bidirectional buckets


# ---------------- relative position bias (host-side glue, computed ONCE) ----------------
def _relative_position_bucket(rel_pos, bidirectional=True,
                              num_buckets=NUM_BUCKETS, max_distance=MAX_DISTANCE):
    rel_buckets = jnp.zeros_like(rel_pos)
    if bidirectional:
        num_buckets //= 2
        rel_buckets = rel_buckets + (rel_pos > 0).astype(jnp.int32) * num_buckets
        rel_pos = jnp.abs(rel_pos)
    else:
        rel_pos = -jnp.minimum(rel_pos, jnp.zeros_like(rel_pos))
    max_exact = num_buckets // 2
    is_small = rel_pos < max_exact
    # HF computes log(0) = -inf on the non-selected branch of the where; it is masked
    # and harmless, but we clamp to keep the discarded value finite (same semantics).
    safe_rel = jnp.maximum(rel_pos, 1)
    rel_if_large = max_exact + (
        jnp.log(safe_rel.astype(jnp.float32) / max_exact)
        / math.log(max_distance / max_exact)
        * (num_buckets - max_exact)
    ).astype(jnp.int32)
    rel_if_large = jnp.minimum(rel_if_large, num_buckets - 1)
    rel_buckets = rel_buckets + jnp.where(is_small, rel_pos, rel_if_large)
    return rel_buckets


def compute_position_bias(rel_bias_table, q_len, k_len):
    """rel_bias_table: (num_buckets, n_heads) -> dense (n_heads, q_len, k_len)."""
    context_pos = jnp.arange(q_len, dtype=jnp.int32)[:, None]
    memory_pos = jnp.arange(k_len, dtype=jnp.int32)[None, :]
    rel_pos = memory_pos - context_pos
    buckets = _relative_position_bucket(rel_pos, bidirectional=not IS_DECODER)
    values = rel_bias_table[buckets]                 # (q, k, H)
    return jnp.transpose(values, (2, 0, 1))          # (H, q, k)


# ---------------- Pallas kernel ----------------
def _make_kernel(batch, seq, d_model, n_heads, d_kv, eps):
    inner = n_heads * d_kv
    bs = batch * seq

    def kernel(x_ref, lnw_ref, wqkv_ref, wo3_ref, bias_ref, out_ref):
        # x_ref: (B*S, D); lnw: (1, D); wqkv: (D, 3*inner); wo3: (H, d_kv, D); bias: (H, S, S)
        x = x_ref[...]                                           # (B*S, D) f32

        # --- T5LayerNorm (RMS norm, no mean subtraction) ---
        var = jnp.mean(x * x, axis=-1, keepdims=True)            # (B*S, 1)
        normed = x * jax.lax.rsqrt(var + eps) * lnw_ref[...]     # (B*S, D)

        # --- fused Q|K|V projection (one MXU push), no bias ---
        qkv = jnp.dot(normed, wqkv_ref[...],
                      preferred_element_type=jnp.float32)        # (B*S, 3*inner)

        bias = bias_ref[...]                                     # (H, S, S)

        # --- per-head attention, batched over B via dot_general batch dims ---
        o = None
        for h in range(n_heads):
            qh = qkv[:, h * d_kv:(h + 1) * d_kv].reshape(batch, seq, d_kv)
            kh = qkv[:, inner + h * d_kv: inner + (h + 1) * d_kv].reshape(batch, seq, d_kv)
            vh = qkv[:, 2 * inner + h * d_kv: 2 * inner + (h + 1) * d_kv].reshape(batch, seq, d_kv)

            # scores[b,i,j] = sum_d q[b,i,d] * k[b,j,d]   (no 1/sqrt(d_kv) scaling, per T5)
            scores = jax.lax.dot_general(
                qh, kh, (((2,), (2,)), ((0,), (0,))),
                preferred_element_type=jnp.float32)              # (B, S, S)
            scores = scores + bias[h]                            # broadcast over batch
            scores = scores - jnp.max(scores, axis=-1, keepdims=True)
            e = jnp.exp(scores)
            p = e * pl.reciprocal(jnp.sum(e, axis=-1, keepdims=True), approx=True)

            ctx = jax.lax.dot_general(
                p, vh, (((2,), (1,)), ((0,), (0,))),
                preferred_element_type=jnp.float32)              # (B, S, d_kv)

            # Distribute the output projection per head: o += ctx_h @ (Wo^T)_h.
            # This removes the lane-dim concat of head outputs entirely.
            oh = jnp.dot(ctx.reshape(bs, d_kv), wo3_ref[h],
                         preferred_element_type=jnp.float32)     # (B*S, D)
            o = oh if o is None else o + oh

        # --- residual (dropout is identity in eval) ---
        out_ref[...] = x + o

    return kernel


# ---------------- wrappers ----------------
def prepare_params(ln_w, wq, wk, wv, wo, rel_bias_table, seq_len):
    """One-time (per-model / per-seq-length) prep: fused weights + dense position bias."""
    d_model = wq.shape[1]
    n_heads = rel_bias_table.shape[1]
    d_kv = wq.shape[0] // n_heads
    wqkv_t = jnp.concatenate([wq.T, wk.T, wv.T], axis=1)        # (D, 3*inner)
    wo3 = wo.T.reshape(n_heads, d_kv, d_model)                   # (H, d_kv, D)
    ln_w2 = ln_w.reshape(1, d_model)                             # (1, D)
    pos_bias = compute_position_bias(rel_bias_table, seq_len, seq_len).astype(jnp.float32)
    return dict(ln_w=ln_w2, wqkv_t=wqkv_t, wo3=wo3, pos_bias=pos_bias,
                n_heads=n_heads, d_kv=d_kv)


def t5_layer_self_attention(x, params):
    """x: (B, S, D_MODEL). Returns (hidden_states, position_bias) like the module
    (present_key_value is None in this eval-mode path)."""
    Bz, Sz, Dz = x.shape
    kernel = _make_kernel(Bz, Sz, Dz, params["n_heads"], params["d_kv"], EPS)

    x2 = x.reshape(Bz * Sz, Dz)                                  # free reshape (glue)
    vmem = pl.BlockSpec(memory_space=pltpu.MemorySpace.VMEM)     # whole array in VMEM, no grid

    out2 = pl.pallas_call(
        kernel,
        out_shape=jax.ShapeDtypeStruct((Bz * Sz, Dz), x.dtype),
        in_specs=[vmem, vmem, vmem, vmem, vmem],
        out_specs=vmem,
    )(x2, params["ln_w"], params["wqkv_t"], params["wo3"], params["pos_bias"])

    return out2.reshape(Bz, Sz, Dz), params["pos_bias"][None]    # (B,S,D), (1,H,S,S)


# ---------------- pure-JAX reference (for sanity check) ----------------
def reference(x, ln_w, wq, wk, wv, wo, rel_bias_table):
    var = jnp.mean(x * x, axis=-1, keepdims=True)
    normed = x * jax.lax.rsqrt(var + EPS) * ln_w
    q = normed @ wq.T
    k = normed @ wk.T
    v = normed @ wv.T

    def split(t):  # (B,S,INNER) -> (B,H,S,d_kv)
        return t.reshape(x.shape[0], x.shape[1], N_HEADS, D_KV).transpose(0, 2, 1, 3)

    qh, kh, vh = split(q), split(k), split(v)
    scores = jnp.einsum("bhqd,bhkd->bhqk", qh, kh)
    scores = scores + compute_position_bias(rel_bias_table, x.shape[1], x.shape[1])[None]
    attn = jax.nn.softmax(scores.astype(jnp.float32), axis=-1).astype(scores.dtype)
    ctx = jnp.einsum("bhqk,bhkd->bhqd", attn, vh)
    ctx = ctx.transpose(0, 2, 1, 3).reshape(x.shape[0], x.shape[1], INNER)
    return x + ctx @ wo.T


if __name__ == "__main__":
    key = jax.random.PRNGKey(0)
    kx, kq, kk, kv, ko, kb = jax.random.split(key, 6)

    x = jax.random.normal(kx, (B, S, D_MODEL), dtype=jnp.float32)
    ln_w = jnp.ones((D_MODEL,), dtype=jnp.float32)                       # T5LayerNorm init
    wq = jax.random.normal(kq, (INNER, D_MODEL), dtype=jnp.float32) * 0.05
    wk = jax.random.normal(kk, (INNER, D_MODEL), dtype=jnp.float32) * 0.05
    wv = jax.random.normal(kv, (INNER, D_MODEL), dtype=jnp.float32) * 0.05
    wo = jax.random.normal(ko, (D_MODEL, INNER), dtype=jnp.float32) * 0.05
    rel_bias_table = jax.random.normal(kb, (NUM_BUCKETS, N_HEADS), dtype=jnp.float32) * 0.1

    params = prepare_params(ln_w, wq, wk, wv, wo, rel_bias_table, S)     # hoisted, once
    out, pos_bias = t5_layer_self_attention(x, params)
    out = jax.block_until_ready(out)

    ref = reference(x, ln_w, wq, wk, wv, wo, rel_bias_table)
    # Tolerance slightly loosened vs. 1e-4 because the softmax denominator uses the
    # EUP approximate reciprocal (pl.reciprocal(approx=True)); errors remain << 1e-3.
    assert jnp.allclose(out, ref, atol=2e-3, rtol=2e-3), (
        float(jnp.max(jnp.abs(out - ref))))

    # TODO(synk): comp_mask / sum_mask / sum_attn_mask / attention_mask / past_key_value /
    # layer_head_mask / pruned_heads / training-mode dropout paths of T5Attention_CCM are
    # not exercised here (eval-mode self-attention only).
    print("KERNEL_OK")
</pallas_src>

<mosaic_0001>
module attributes {stable_mosaic.version = 11 : i64} {
  func.func @kernel(%arg0: memref<16x32xf32, #tpu.memory_space<vmem>>, %arg1: memref<1x32xf32, #tpu.memory_space<vmem>>, %arg2: memref<32x96xf32, #tpu.memory_space<vmem>>, %arg3: memref<4x8x32xf32, #tpu.memory_space<vmem>>, %arg4: memref<4x8x8xf32, #tpu.memory_space<vmem>>, %arg5: memref<16x32xf32, #tpu.memory_space<vmem>>) attributes {dimension_semantics = [], scalar_prefetch = 0 : i64, scratch_operands = 0 : i64, tpu.core_type = #tpu.core_type<tc>} {
    %c0 = arith.constant 0 : index
    %c0_0 = arith.constant 0 : index
    %0 = vector.load %arg0[%c0, %c0_0] : memref<16x32xf32, #tpu.memory_space<vmem>>, vector<16x32xf32>
    %1 = arith.mulf %0, %0 : vector<16x32xf32>
    %cst = arith.constant dense<0.000000e+00> : vector<16xf32>
    %2 = vector.multi_reduction <add>, %1, %cst [1] : vector<16x32xf32> to vector<16xf32>
    %3 = vector.shape_cast %2 : vector<16xf32> to vector<16x1xf32>
    %cst_1 = arith.constant 3.200000e+01 : f32
    %4 = vector.broadcast %cst_1 : f32 to vector<16x1xf32>
    %5 = arith.divf %3, %4 : vector<16x1xf32>
    %cst_2 = arith.constant 9.99999997E-7 : f32
    %6 = vector.broadcast %cst_2 : f32 to vector<16x1xf32>
    %7 = arith.addf %5, %6 : vector<16x1xf32>
    %8 = math.rsqrt %7 : vector<16x1xf32>
    %9 = vector.broadcast %8 : vector<16x1xf32> to vector<16x32xf32>
    %10 = arith.mulf %0, %9 : vector<16x32xf32>
    %c0_3 = arith.constant 0 : index
    %c0_4 = arith.constant 0 : index
    %11 = vector.load %arg1[%c0_3, %c0_4] : memref<1x32xf32, #tpu.memory_space<vmem>>, vector<1x32xf32>
    %12 = vector.broadcast %11 : vector<1x32xf32> to vector<16x32xf32>
    %13 = arith.mulf %10, %12 : vector<16x32xf32>
    %c0_5 = arith.constant 0 : index
    %c0_6 = arith.constant 0 : index
    %14 = vector.load %arg2[%c0_5, %c0_6] : memref<32x96xf32, #tpu.memory_space<vmem>>, vector<32x96xf32>
    %cst_7 = arith.constant dense<0.000000e+00> : vector<16x96xf32>
    %15 = tpu.matmul %13, %14, %cst_7 {dimension_numbers = #tpu.dot_dimension_numbers<[1], [0], [0], [1], [0, 0, 1, 1], [], []>} : vector<16x32xf32>, vector<32x96xf32>, vector<16x96xf32> -> vector<16x96xf32>
    %c0_8 = arith.constant 0 : index
    %c0_9 = arith.constant 0 : index
    %c0_10 = arith.constant 0 : index
    %16 = vector.load %arg4[%c0_8, %c0_9, %c0_10] : memref<4x8x8xf32, #tpu.memory_space<vmem>>, vector<4x8x8xf32>
    %17 = vector.extract_strided_slice %15 {offsets = [0, 0], sizes = [16, 8], strides = [1, 1]} : vector<16x96xf32> to vector<16x8xf32>
    %18 = vector.shape_cast %17 : vector<16x8xf32> to vector<2x8x8xf32>
    %19 = vector.extract_strided_slice %15 {offsets = [0, 32], sizes = [16, 8], strides = [1, 1]} : vector<16x96xf32> to vector<16x8xf32>
    %20 = vector.shape_cast %19 : vector<16x8xf32> to vector<2x8x8xf32>
    %21 = vector.extract_strided_slice %15 {offsets = [0, 64], sizes = [16, 8], strides = [1, 1]} : vector<16x96xf32> to vector<16x8xf32>
    %22 = vector.shape_cast %21 : vector<16x8xf32> to vector<2x8x8xf32>
    %cst_11 = arith.constant dense<0.000000e+00> : vector<2x8x8xf32>
    %23 = tpu.matmul %18, %20, %cst_11 {dimension_numbers = #tpu.dot_dimension_numbers<[2], [2], [1], [1], [0, 0, 0, 1, 1, 1], [0], [0]>} : vector<2x8x8xf32>, vector<2x8x8xf32>, vector<2x8x8xf32> -> vector<2x8x8xf32>
    %24 = vector.extract_strided_slice %16 {offsets = [0, 0, 0], sizes = [1, 8, 8], strides = [1, 1, 1]} : vector<4x8x8xf32> to vector<1x8x8xf32>
    %25 = vector.shape_cast %24 : vector<1x8x8xf32> to vector<8x8xf32>
    %26 = vector.shape_cast %25 : vector<8x8xf32> to vector<1x8x8xf32>
    %27 = vector.broadcast %26 : vector<1x8x8xf32> to vector<2x8x8xf32>
    %28 = arith.addf %23, %27 : vector<2x8x8xf32>
    %cst_12 = arith.constant dense<0xFF800000> : vector<2x8xf32>
    %29 = vector.multi_reduction <maximumf>, %28, %cst_12 [2] : vector<2x8x8xf32> to vector<2x8xf32>
    %30 = vector.shape_cast %29 : vector<2x8xf32> to vector<2x8x1xf32>
    %31 = vector.broadcast %30 : vector<2x8x1xf32> to vector<2x8x8xf32>
    %32 = arith.subf %28, %31 : vector<2x8x8xf32>
    %33 = math.exp %32 : vector<2x8x8xf32>
    %cst_13 = arith.constant dense<0.000000e+00> : vector<2x8xf32>
    %34 = vector.multi_reduction <add>, %33, %cst_13 [2] : vector<2x8x8xf32> to vector<2x8xf32>
    %35 = vector.shape_cast %34 : vector<2x8xf32> to vector<2x8x1xf32>
    %36 = tpu.reciprocal %35 {approx = true} : vector<2x8x1xf32> -> vector<2x8x1xf32>
    %37 = vector.broadcast %36 : vector<2x8x1xf32> to vector<2x8x8xf32>
    %38 = arith.mulf %33, %37 : vector<2x8x8xf32>
    %cst_14 = arith.constant dense<0.000000e+00> : vector<2x8x8xf32>
    %39 = tpu.matmul %38, %22, %cst_14 {dimension_numbers = #tpu.dot_dimension_numbers<[2], [1], [1], [2], [0, 0, 0, 1, 1, 2], [0], [0]>} : vector<2x8x8xf32>, vector<2x8x8xf32>, vector<2x8x8xf32> -> vector<2x8x8xf32>
    %40 = vector.shape_cast %39 : vector<2x8x8xf32> to vector<16x8xf32>
    %c0_15 = arith.constant 0 : index
    %c0_16 = arith.constant 0 : index
    %c0_17 = arith.constant 0 : index
    %41 = vector.load %arg3[%c0_15, %c0_16, %c0_17] : memref<4x8x32xf32, #tpu.memory_space<vmem>>, vector<1x8x32xf32>
    %42 = vector.shape_cast %41 : vector<1x8x32xf32> to vector<8x32xf32>
    %cst_18 = arith.constant dense<0.000000e+00> : vector<16x32xf32>
    %43 = tpu.matmul %40, %42, %cst_18 {dimension_numbers = #tpu.dot_dimension_numbers<[1], [0], [0], [1], [0, 0, 1, 1], [], []>} : vector<16x8xf32>, vector<8x32xf32>, vector<16x32xf32> -> vector<16x32xf32>
    %44 = vector.extract_strided_slice %15 {offsets = [0, 8], sizes = [16, 8], strides = [1, 1]} : vector<16x96xf32> to vector<16x8xf32>
    %45 = vector.shape_cast %44 : vector<16x8xf32> to vector<2x8x8xf32>
    %46 = vector.extract_strided_slice %15 {offsets = [0, 40], sizes = [16, 8], strides = [1, 1]} : vector<16x96xf32> to vector<16x8xf32>
    %47 = vector.shape_cast %46 : vector<16x8xf32> to vector<2x8x8xf32>
    %48 = vector.extract_strided_slice %15 {offsets = [0, 72], sizes = [16, 8], strides = [1, 1]} : vector<16x96xf32> to vector<16x8xf32>
    %49 = vector.shape_cast %48 : vector<16x8xf32> to vector<2x8x8xf32>
    %cst_19 = arith.constant dense<0.000000e+00> : vector<2x8x8xf32>
    %50 = tpu.matmul %45, %47, %cst_19 {dimension_numbers = #tpu.dot_dimension_numbers<[2], [2], [1], [1], [0, 0, 0, 1, 1, 1], [0], [0]>} : vector<2x8x8xf32>, vector<2x8x8xf32>, vector<2x8x8xf32> -> vector<2x8x8xf32>
    %51 = vector.extract_strided_slice %16 {offsets = [1, 0, 0], sizes = [1, 8, 8], strides = [1, 1, 1]} : vector<4x8x8xf32> to vector<1x8x8xf32>
    %52 = vector.shape_cast %51 : vector<1x8x8xf32> to vector<8x8xf32>
    %53 = vector.shape_cast %52 : vector<8x8xf32> to vector<1x8x8xf32>
    %54 = vector.broadcast %53 : vector<1x8x8xf32> to vector<2x8x8xf32>
    %55 = arith.addf %50, %54 : vector<2x8x8xf32>
    %cst_20 = arith.constant dense<0xFF800000> : vector<2x8xf32>
    %56 = vector.multi_reduction <maximumf>, %55, %cst_20 [2] : vector<2x8x8xf32> to vector<2x8xf32>
    %57 = vector.shape_cast %56 : vector<2x8xf32> to vector<2x8x1xf32>
    %58 = vector.broadcast %57 : vector<2x8x1xf32> to vector<2x8x8xf32>
    %59 = arith.subf %55, %58 : vector<2x8x8xf32>
    %60 = math.exp %59 : vector<2x8x8xf32>
    %cst_21 = arith.constant dense<0.000000e+00> : vector<2x8xf32>
    %61 = vector.multi_reduction <add>, %60, %cst_21 [2] : vector<2x8x8xf32> to vector<2x8xf32>
    %62 = vector.shape_cast %61 : vector<2x8xf32> to vector<2x8x1xf32>
    %63 = tpu.reciprocal %62 {approx = true} : vector<2x8x1xf32> -> vector<2x8x1xf32>
    %64 = vector.broadcast %63 : vector<2x8x1xf32> to vector<2x8x8xf32>
    %65 = arith.mulf %60, %64 : vector<2x8x8xf32>
    %cst_22 = arith.constant dense<0.000000e+00> : vector<2x8x8xf32>
    %66 = tpu.matmul %65, %49, %cst_22 {dimension_numbers = #tpu.dot_dimension_numbers<[2], [1], [1], [2], [0, 0, 0, 1, 1, 2], [0], [0]>} : vector<2x8x8xf32>, vector<2x8x8xf32>, vector<2x8x8xf32> -> vector<2x8x8xf32>
    %67 = vector.shape_cast %66 : vector<2x8x8xf32> to vector<16x8xf32>
    %c1 = arith.constant 1 : index
    %c0_23 = arith.constant 0 : index
    %c0_24 = arith.constant 0 : index
    %68 = vector.load %arg3[%c1, %c0_23, %c0_24] : memref<4x8x32xf32, #tpu.memory_space<vmem>>, vector<1x8x32xf32>
    %69 = vector.shape_cast %68 : vector<1x8x32xf32> to vector<8x32xf32>
    %cst_25 = arith.constant dense<0.000000e+00> : vector<16x32xf32>
    %70 = tpu.matmul %67, %69, %cst_25 {dimension_numbers = #tpu.dot_dimension_numbers<[1], [0], [0], [1], [0, 0, 1, 1], [], []>} : vector<16x8xf32>, vector<8x32xf32>, vector<16x32xf32> -> vector<16x32xf32>
    %71 = arith.addf %43, %70 : vector<16x32xf32>
    %72 = vector.extract_strided_slice %15 {offsets = [0, 16], sizes = [16, 8], strides = [1, 1]} : vector<16x96xf32> to vector<16x8xf32>
    %73 = vector.shape_cast %72 : vector<16x8xf32> to vector<2x8x8xf32>
    %74 = vector.extract_strided_slice %15 {offsets = [0, 48], sizes = [16, 8], strides = [1, 1]} : vector<16x96xf32> to vector<16x8xf32>
    %75 = vector.shape_cast %74 : vector<16x8xf32> to vector<2x8x8xf32>
    %76 = vector.extract_strided_slice %15 {offsets = [0, 80], sizes = [16, 8], strides = [1, 1]} : vector<16x96xf32> to vector<16x8xf32>
    %77 = vector.shape_cast %76 : vector<16x8xf32> to vector<2x8x8xf32>
    %cst_26 = arith.constant dense<0.000000e+00> : vector<2x8x8xf32>
    %78 = tpu.matmul %73, %75, %cst_26 {dimension_numbers = #tpu.dot_dimension_numbers<[2], [2], [1], [1], [0, 0, 0, 1, 1, 1], [0], [0]>} : vector<2x8x8xf32>, vector<2x8x8xf32>, vector<2x8x8xf32> -> vector<2x8x8xf32>
    %79 = vector.extract_strided_slice %16 {offsets = [2, 0, 0], sizes = [1, 8, 8], strides = [1, 1, 1]} : vector<4x8x8xf32> to vector<1x8x8xf32>
    %80 = vector.shape_cast %79 : vector<1x8x8xf32> to vector<8x8xf32>
    %81 = vector.shape_cast %80 : vector<8x8xf32> to vector<1x8x8xf32>
    %82 = vector.broadcast %81 : vector<1x8x8xf32> to vector<2x8x8xf32>
    %83 = arith.addf %78, %82 : vector<2x8x8xf32>
    %cst_27 = arith.constant dense<0xFF800000> : vector<2x8xf32>
    %84 = vector.multi_reduction <maximumf>, %83, %cst_27 [2] : vector<2x8x8xf32> to vector<2x8xf32>
    %85 = vector.shape_cast %84 : vector<2x8xf32> to vector<2x8x1xf32>
    %86 = vector.broadcast %85 : vector<2x8x1xf32> to vector<2x8x8xf32>
    %87 = arith.subf %83, %86 : vector<2x8x8xf32>
    %88 = math.exp %87 : vector<2x8x8xf32>
    %cst_28 = arith.constant dense<0.000000e+00> : vector<2x8xf32>
    %89 = vector.multi_reduction <add>, %88, %cst_28 [2] : vector<2x8x8xf32> to vector<2x8xf32>
    %90 = vector.shape_cast %89 : vector<2x8xf32> to vector<2x8x1xf32>
    %91 = tpu.reciprocal %90 {approx = true} : vector<2x8x1xf32> -> vector<2x8x1xf32>
    %92 = vector.broadcast %91 : vector<2x8x1xf32> to vector<2x8x8xf32>
    %93 = arith.mulf %88, %92 : vector<2x8x8xf32>
    %cst_29 = arith.constant dense<0.000000e+00> : vector<2x8x8xf32>
    %94 = tpu.matmul %93, %77, %cst_29 {dimension_numbers = #tpu.dot_dimension_numbers<[2], [1], [1], [2], [0, 0, 0, 1, 1, 2], [0], [0]>} : vector<2x8x8xf32>, vector<2x8x8xf32>, vector<2x8x8xf32> -> vector<2x8x8xf32>
    %95 = vector.shape_cast %94 : vector<2x8x8xf32> to vector<16x8xf32>
    %c2 = arith.constant 2 : index
    %c0_30 = arith.constant 0 : index
    %c0_31 = arith.constant 0 : index
    %96 = vector.load %arg3[%c2, %c0_30, %c0_31] : memref<4x8x32xf32, #tpu.memory_space<vmem>>, vector<1x8x32xf32>
    %97 = vector.shape_cast %96 : vector<1x8x32xf32> to vector<8x32xf32>
    %cst_32 = arith.constant dense<0.000000e+00> : vector<16x32xf32>
    %98 = tpu.matmul %95, %97, %cst_32 {dimension_numbers = #tpu.dot_dimension_numbers<[1], [0], [0], [1], [0, 0, 1, 1], [], []>} : vector<16x8xf32>, vector<8x32xf32>, vector<16x32xf32> -> vector<16x32xf32>
    %99 = arith.addf %71, %98 : vector<16x32xf32>
    %100 = vector.extract_strided_slice %15 {offsets = [0, 24], sizes = [16, 8], strides = [1, 1]} : vector<16x96xf32> to vector<16x8xf32>
    %101 = vector.shape_cast %100 : vector<16x8xf32> to vector<2x8x8xf32>
    %102 = vector.extract_strided_slice %15 {offsets = [0, 56], sizes = [16, 8], strides = [1, 1]} : vector<16x96xf32> to vector<16x8xf32>
    %103 = vector.shape_cast %102 : vector<16x8xf32> to vector<2x8x8xf32>
    %104 = vector.extract_strided_slice %15 {offsets = [0, 88], sizes = [16, 8], strides = [1, 1]} : vector<16x96xf32> to vector<16x8xf32>
    %105 = vector.shape_cast %104 : vector<16x8xf32> to vector<2x8x8xf32>
    %cst_33 = arith.constant dense<0.000000e+00> : vector<2x8x8xf32>
    %106 = tpu.matmul %101, %103, %cst_33 {dimension_numbers = #tpu.dot_dimension_numbers<[2], [2], [1], [1], [0, 0, 0, 1, 1, 1], [0], [0]>} : vector<2x8x8xf32>, vector<2x8x8xf32>, vector<2x8x8xf32> -> vector<2x8x8xf32>
    %107 = vector.extract_strided_slice %16 {offsets = [3, 0, 0], sizes = [1, 8, 8], strides = [1, 1, 1]} : vector<4x8x8xf32> to vector<1x8x8xf32>
    %108 = vector.shape_cast %107 : vector<1x8x8xf32> to vector<8x8xf32>
    %109 = vector.shape_cast %108 : vector<8x8xf32> to vector<1x8x8xf32>
    %110 = vector.broadcast %109 : vector<1x8x8xf32> to vector<2x8x8xf32>
    %111 = arith.addf %106, %110 : vector<2x8x8xf32>
    %cst_34 = arith.constant dense<0xFF800000> : vector<2x8xf32>
    %112 = vector.multi_reduction <maximumf>, %111, %cst_34 [2] : vector<2x8x8xf32> to vector<2x8xf32>
    %113 = vector.shape_cast %112 : vector<2x8xf32> to vector<2x8x1xf32>
    %114 = vector.broadcast %113 : vector<2x8x1xf32> to vector<2x8x8xf32>
    %115 = arith.subf %111, %114 : vector<2x8x8xf32>
    %116 = math.exp %115 : vector<2x8x8xf32>
    %cst_35 = arith.constant dense<0.000000e+00> : vector<2x8xf32>
    %117 = vector.multi_reduction <add>, %116, %cst_35 [2] : vector<2x8x8xf32> to vector<2x8xf32>
    %118 = vector.shape_cast %117 : vector<2x8xf32> to vector<2x8x1xf32>
    %119 = tpu.reciprocal %118 {approx = true} : vector<2x8x1xf32> -> vector<2x8x1xf32>
    %120 = vector.broadcast %119 : vector<2x8x1xf32> to vector<2x8x8xf32>
    %121 = arith.mulf %116, %120 : vector<2x8x8xf32>
    %cst_36 = arith.constant dense<0.000000e+00> : vector<2x8x8xf32>
    %122 = tpu.matmul %121, %105, %cst_36 {dimension_numbers = #tpu.dot_dimension_numbers<[2], [1], [1], [2], [0, 0, 0, 1, 1, 2], [0], [0]>} : vector<2x8x8xf32>, vector<2x8x8xf32>, vector<2x8x8xf32> -> vector<2x8x8xf32>
    %123 = vector.shape_cast %122 : vector<2x8x8xf32> to vector<16x8xf32>
    %c3 = arith.constant 3 : index
    %c0_37 = arith.constant 0 : index
    %c0_38 = arith.constant 0 : index
    %124 = vector.load %arg3[%c3, %c0_37, %c0_38] : memref<4x8x32xf32, #tpu.memory_space<vmem>>, vector<1x8x32xf32>
    %125 = vector.shape_cast %124 : vector<1x8x32xf32> to vector<8x32xf32>
    %cst_39 = arith.constant dense<0.000000e+00> : vector<16x32xf32>
    %126 = tpu.matmul %123, %125, %cst_39 {dimension_numbers = #tpu.dot_dimension_numbers<[1], [0], [0], [1], [0, 0, 1, 1], [], []>} : vector<16x8xf32>, vector<8x32xf32>, vector<16x32xf32> -> vector<16x32xf32>
    %127 = arith.addf %99, %126 : vector<16x32xf32>
    %128 = arith.addf %0, %127 : vector<16x32xf32>
    %c0_40 = arith.constant 0 : index
    %c0_41 = arith.constant 0 : index
    %129 = vector.load %arg5[%c0_40, %c0_41] : memref<16x32xf32, #tpu.memory_space<vmem>>, vector<16x32xf32>
    tpu.vector_store %arg5[%c0_40, %c0_41], %128 {strides = array<i32>} : memref<16x32xf32, #tpu.memory_space<vmem>>, vector<16x32xf32>,
    return
  }
}

</mosaic_0001>

<bundles_post_ra>
// kernel: tpu_custom_call.1
= control target key start
LH: loop header
LB: loop body
LE: loop exit
PB: predicated region body
PF: predicated region fallthrough
CT: control target
= control target key end

     0   :  { %10 = vsyncpa [#allocation3], 0  ;;  %s2472_s0 = inlined_call_operand.hbm [shape: f32[16,32], index: 0, kind: input, shape index: {}]   ;;  %s2473_s1 = inlined_call_operand.vmem [shape: f32[1,32], index: 1, kind: input, shape index: {}]   ;;  %s2474_s2 = inlined_call_operand.hbm [shape: f32[32,96], index: 2, kind: input, shape index: {}]   ;;  %s2475_s3 = inlined_call_operand.hbm [shape: f32[4,8,32], index: 3, kind: input, shape index: {}]   ;;  %s2476_s4 = inlined_call_operand.hbm [shape: f32[4,8,8], index: 4, kind: input, shape index: {}]   ;;  %s2477_s5 = inlined_call_operand.hbm [shape: f32[16,32], index: 5, kind: output, shape index: {}]  }
   0x1   :  { %11 = vsyncpa [#allocation6], 0 }
   0x2   :  { %12 = vsyncpa [#allocation9], 0 }
   0x3   :  { %13 = vsyncpa [#allocation4], 0  ;;  %s2231_s18 = smov [#allocation5]   ;;  %s2232_s20 = smov [#allocation2]  }
   0x4   :  { %s33_s19 = sshll.u32 %s2231_s18, 4  ;;  %s19_s21 = sshll.u32 %s2232_s20, 4  ;;  %s34_s19 = int_to_ptr.vmem [resolvable:$true] %s33_s19  ;;  %s20_s21 = int_to_ptr.vmem [resolvable:$true] %s19_s21 }
   0x5   :  { %s2131_s22 = scalar_lea.vmem %s34_s19, 512  ;;  %p2136_p1 = scmp.lt.s32.totalorder %s34_s19, %s34_s19 }
   0x6   :  { %p2132_p0 = scmp.ne.s32.totalorder %s34_s19, %s2131_s22  ;;  %p2137_p2 = scmp.lt.s32.totalorder %s2131_s22, %s2131_s22 }
   0x8   :  { %p2138_p3 = por %p2137_p2, %p2136_p1 }
   0xa   :  { %p2139_p4 = pnand %p2138_p3, %p2132_p0 }
   0xc   :  { %2142 = shalt.err (!%p2139_p4)
}
   0xd   :  { %s2233_s23 = smov 128   ;;  %s2234_s24 = smov 8  }
   0xe   :  { %39 = dma.hbm_to_vmem [thread:$0]  %s2474_s2, 512, %s34_s19, [#allocation6], %s2233_s23, %s2233_s23, %s2234_s24  }
   0xf   :  { %s2151_s27 = scalar_lea.vmem %s20_s21, 256  ;;  %p2156_p6 = scmp.lt.s32.totalorder %s20_s21, %s20_s21 }
  0x10   :  { %p2152_p5 = scmp.ne.s32.totalorder %s20_s21, %s2151_s27  ;;  %p2157_p7 = scmp.lt.s32.totalorder %s2151_s27, %s2151_s27 }
  0x12   :  { %p2158_p8 = por %p2157_p7, %p2156_p6 }
  0x14   :  { %p2159_p9 = pnand %p2158_p8, %p2152_p5 }
  0x16   :  { %2162 = shalt.err (!%p2159_p9)
}
  0x17   :  { %25 = dma.hbm_to_vmem [thread:$0]  %s2472_s0, 256, %s20_s21, [#allocation3], %s2233_s23, %s2233_s23, %s2234_s24  }
  0x18   :  { %s2235_s30 = smov [#allocation7]   ;;  %s2236_s7 = smov [#allocation8]  }
  0x19   :  { %s45_s6 = sshll.u32 %s2235_s30, 4  ;;  %s57_s8 = sshll.u32 %s2236_s7, 4  ;;  %s46_s6 = int_to_ptr.vmem [resolvable:$true] %s45_s6  ;;  %s58_s8 = int_to_ptr.vmem [resolvable:$true] %s57_s8 }
  0x1a   :  { %s2171_s2 = scalar_lea.vmem %s46_s6, 512  ;;  %p2176_p11 = scmp.lt.s32.totalorder %s46_s6, %s46_s6 }
  0x1b   :  { %p2172_p10 = scmp.ne.s32.totalorder %s46_s6, %s2171_s2  ;;  %p2177_p12 = scmp.lt.s32.totalorder %s2171_s2, %s2171_s2 }
  0x1d   :  { %p2178_p13 = por %p2177_p12, %p2176_p11 }
  0x1f   :  { %p2179_p0 = pnand %p2178_p13, %p2172_p10 }
  0x21   :  { %2182 = shalt.err (!%p2179_p0)
}
  0x22   :  { %51 = dma.hbm_to_vmem [thread:$0]  %s2475_s3, 512, %s46_s6, [#allocation6], %s2233_s23, %s2233_s23, %s2234_s24  }
  0x23   :  { %s2191_s0 = scalar_lea.vmem %s58_s8, 512  ;;  %p2196_p2 = scmp.lt.s32.totalorder %s58_s8, %s58_s8 }
  0x24   :  { %p2192_p1 = scmp.ne.s32.totalorder %s58_s8, %s2191_s0  ;;  %p2197_p3 = scmp.lt.s32.totalorder %s2191_s0, %s2191_s0 }
  0x26   :  { %p2198_p4 = por %p2197_p3, %p2196_p2 }
  0x28   :  { %p2199_p5 = pnand %p2198_p4, %p2192_p1 }
  0x2a   :  { %2202 = shalt.err (!%p2199_p5)
}
  0x2b   :  { %63 = dma.hbm_to_vmem [thread:$0]  %s2476_s4, 512, %s58_s8, [#allocation9], %s2233_s23, %s2233_s23, %s2234_s24  }
  0x2c   :  { %2223 = dma.done.wait [#allocation3], 256  }
  0x2d   :  { %2224 = vsyncadd [#allocation3], 4294967040 }
  0x2e   :  { %2225 = dma.done.wait [#allocation6], 1024  }
  0x2f   :  { %2226 = vsyncadd [#allocation6], 4294966272 }
  0x30   :  { %2227 = dma.done.wait [#allocation9], 512  }
  0x31   :  { %2228 = vsyncadd [#allocation9], 4294966784  ;;  %v2305_v0 = vld [vmem:[#allocation2] sm:$0xff]  ;;  %vm80_vm0 = vcmask 261120   ;;  %v2307_v1 = vld [vmem:[#allocation2 + $0x8] sm:$0xff]  ;;  %v2237_v23 = vmov 0.0  }
  0x32   :  { %v78_v2 = vmul.f32 %v2305_v0, %v2305_v0  ;;  %v79_v3 = vmul.f32 %v2307_v1, %v2307_v1  ;;  %v108_v6 = vld [vmem:[#allocation5 + $0x18] sm:$0xff]  ;;  %v107_v7 = vld [vmem:[#allocation5 + $0x10] sm:$0xff]  ;;  %v106_v8 = vld [vmem:[#allocation5 + $0x8] sm:$0xff]  ;;  %1967 = vmatprep.subr.mxu1 %v2237_v23  ;;  %vm2238_vm1 = vmmov 0   ;;  %vm197_vm2 = vcmask 64512   ;;  %s2240_s13 = smov 88  }
  0x33   :  { %1956 = vmatprep.subr.mxu0 %v108_v6  ;;  %v105_v9 = vld [vmem:[#allocation5] sm:$0xff]  ;;  %v1871_v17 = vld [vmem:[%s2473_s1] ss:$0 sm:$0xff]  ;;  %1969 = vmatprep.mubr.msk.f32.mxu1 %vm2238_vm1, %v2237_v23  ;;  %s2239_s1 = smov 96   ;;  %s2241_s14 = smov 64   ;;  %v191_v61 = vld [vmem:[#allocation8 + $0x8] sm:$0xff] }
  0x34   :  { %v81_v4 = vsel %vm80_vm0, %v78_v2, 0.0  ;;  %v84_v5 = vsel %vm80_vm0, %v79_v3, 0.0  ;;  %1957 = vmatpush3.msra.mxu0 %v108_v6  ;;  %v190_v28 = vld [vmem:[#allocation8] sm:$0xff]  ;;  %s2242_s15 = smov 120   ;;  %s2243_s16 = smov 56  }
  0x35   :  { %82 = vadd.xlane.f32.xlu0 %v81_v4  ;;  %1958 = vmatprep.subr.mxu0 %v107_v7  ;;  %s2244_s17 = smov 80   ;;  %s2245_s18 = smov 112  }
  0x36   :  { %1959 = vmatpush3.msra.mxu0 %v107_v7  ;;  %s2246_s19 = smov 48   ;;  %s2247_s20 = smov 72  }
  0x37   :  { %1960 = vmatprep.subr.mxu0 %v106_v8  ;;  %s2248_s21 = smov 104   ;;  %s2249_s22 = smov 40  }
  0x38   :  { %1961 = vmatpush3.msra.mxu0 %v106_v8  ;;  %s2250_s25 = smov [#allocation10]  }
  0x39   :  { %85 = vadd.xlane.f32.xlu0 %v84_v5  ;;  %1962 = vmatprep.subr.mxu0 %v105_v9  ;;  %s1857_s26 = sshll.u32 %s2250_s25, 4  ;;  %s1858_s26 = int_to_ptr.vmem [resolvable:$true] %s1857_s26 }
  0x3a   :  { %1963 = vmatpush3.msra.mxu0 %v105_v9  ;;  %s2203_s27 = scalar_lea.vmem %s1858_s26, 256  ;;  %p2208_p7 = scmp.lt.s32.totalorder %s1858_s26, %s1858_s26 }
  0x3b   :  { %1977 = vmatprep.subr.mxu0 %v2237_v23  ;;  %p2204_p6 = scmp.ne.s32.totalorder %s1858_s26, %s2203_s27  ;;  %p2209_p8 = scmp.lt.s32.totalorder %s2203_s27, %s2203_s27 }
  0x3d   :  { %p2210_p9 = por %p2209_p8, %p2208_p7 }
  0x3f   :  { %p2211_p10 = pnand %p2210_p9, %p2204_p6 }
  0xbe   :  { %v83_v10 = vpop.xlane.xlu0 %82 }
  0xbf   :  { %v88_v11 = vmul.f32 0.03125, %v83_v10 }
  0xc1   :  { %v90_v12 = vadd.f32 1e-06, %v88_v11 }
  0xc2   :  { %v86_v13 = vpop.xlane.xlu0 %85 }
  0xc3   :  { %2087 = vrsqrt.f32 %v90_v12  ;;  %v89_v14 = vmul.f32 0.03125, %v86_v13 }
  0xc5   :  { %v91_v15 = vadd.f32 1e-06, %v89_v14 }
  0xc7   :  { %2089 = vrsqrt.f32 %v91_v15 }
  0xd0   :  { %v2088_v16 = vpop.eup %2087 }
  0xd1   :  { %v94_v18 = vmul.f32 %v2088_v16, %v2305_v0 }
  0xd3   :  { %v103_v19 = vmul.f32 %v1871_v17, %v94_v18 }
  0xd4   :  { %v2090_v20 = vpop.eup %2089 }
  0xd5   :  { %v95_v21 = vmul.f32 %v2090_v20, %v2307_v1  ;;  %1964 = vmatprep.mubr.msk.f32.mxu0 %vm80_vm0, %v103_v19 }
  0xd7   :  { %v104_v22 = vmul.f32 %v1871_v17, %v95_v21  ;;  %v523_v21 = vld [vmem:[#allocation7] sm:$0xff] }
  0xd9   :  { %1965 = vmatmul.mubr.msk.f32.vlgmr.msra.gmra.mxu0 %vm80_vm0, %v104_v22 }
  0xda   :  { %1979 = vmatprep.mubr.msk.f32.mxu0 %vm2238_vm1, %v2237_v23 }
 0x199   :  { %v2328_v24 = vpop.f32.mrf.mxu0 }
 0x19b   :  { %v2330_v25 = vpop.f32.mrf.mxu0 }
 0x19c   :  { %195 = vrot.lane.b32.xlu1 %v2330_v25, %s2239_s1 }
 0x1a0   :  { %273 = vrot.lane.b32.xlu1 %v2328_v24, %s2239_s1 }
 0x20e   :  { %v196_v26 = vpop.permute.xlu1 %195 }
 0x20f   :  { %1968 = vmatpush3.xpose.msk.msra.mxu1 %vm197_vm2, %v196_v26 }
 0x210   :  { %1972 = vmatprep.subr.mxu1 %v2237_v23 }
 0x212   :  { %1970 = vmatmul.mubr.msk.f32.vlgmr.msra.gmra.mxu1 %vm197_vm2, %v2330_v25  ;;  %v274_v27 = vpop.permute.xlu1 %273 }
 0x213   :  { %1973 = vmatpush3.xpose.msk.msra.mxu1 %vm197_vm2, %v274_v27  ;;  %1974 = vmatprep.mubr.msk.f32.mxu1 %vm2238_vm1, %v2237_v23 }
 0x214   :  { %1982 = vmatprep.subr.mxu1 %v2237_v23 }
 0x216   :  { %1975 = vmatmul.mubr.msk.f32.vlgmr.msra.gmra.mxu1 %vm197_vm2, %v2328_v24 }
 0x217   :  { %1984 = vmatprep.mubr.msk.f32.mxu1 %vm2238_vm1, %v2237_v23 }
 0x2d2   :  { %v268_v29 = vpop.f32.mrf.mxu1 }
 0x2d3   :  { %v269_v30 = vadd.f32 %v268_v29, %v190_v28 }
 0x2d4   :  { %v1971_v31 = vpop.f32.mrf.mxu1 }
 0x2d5   :  { %v349_v32 = vsel %vm197_vm2, %v269_v30, -inf }
 0x2d6   :  { %350 = vmax.xlane.f32.xlu0 %v349_v32  ;;  %v345_v33 = vpop.f32.mrf.mxu1 }
 0x2d7   :  { %v346_v34 = vadd.f32 %v345_v33, %v190_v28 }
 0x2d8   :  { %v1976_v35 = vpop.f32.mrf.mxu1 }
 0x2d9   :  { %v352_v36 = vsel %vm197_vm2, %v346_v34, -inf  ;;  %v855_v35 = vld [vmem:[#allocation7 + $0x8] sm:$0xff] }
 0x2da   :  { %353 = vmax.xlane.f32.xlu1 %v352_v36 }
 0x2eb   :  { %526 = vrot.lane.b32.xlu1 %v2330_v25, %s2240_s13 }
 0x2ec   :  { %371 = vrot.lane.b32.xlu0 %v2330_v25, %s2241_s14 }
 0x2f0   :  { %447 = vrot.lane.b32.xlu0 %v2328_v24, %s2241_s14 }
 0x2f4   :  { %604 = vrot.lane.b32.xlu0 %v2328_v24, %s2240_s13 }
 0x35f   :  { %v351_v37 = vpop.xlane.xlu0 %350 }
 0x360   :  { %v355_v38 = vsub.f32 %v269_v30, %v351_v37 }
 0x362   :  { %v357_v39 = vmul.f32 1.442695, %v355_v38 }
 0x363   :  { %v372_v40 = vpop.permute.xlu0 %371  ;;  %v354_v41 = vpop.xlane.xlu1 %353 }
 0x364   :  { %2091 = vpow2.f32 %v357_v39  ;;  %v356_v42 = vsub.f32 %v346_v34, %v354_v41  ;;  %1978 = vmatpush3.msra.mxu0 %v372_v40 }
 0x365   :  { %1987 = vmatprep.subr.mxu0 %v2237_v23 }
 0x366   :  { %v359_v43 = vmul.f32 1.442695, %v356_v42 }
 0x367   :  { %v448_v44 = vpop.permute.xlu0 %447  ;;  %v527_v54 = vpop.permute.xlu1 %526 }
 0x368   :  { %2093 = vpow2.f32 %v359_v43  ;;  %1983 = vmatpush3.msra.mxu1 %v448_v44  ;;  %v192_v43 = vld [vmem:[#allocation8 + $0x10] sm:$0xff] }
 0x369   :  { %1992 = vmatprep.subr.mxu1 %v2237_v23 }
 0x36b   :  { %v605_v49 = vpop.permute.xlu0 %604 }
 0x371   :  { %v2092_v45 = vpop.eup %2091 }
 0x372   :  { %v361_v46 = vsel %vm197_vm2, %v2092_v45, 0.0 }
 0x373   :  { %362 = vadd.xlane.f32.xlu0 %v361_v46 }
 0x375   :  { %v2094_v47 = vpop.eup %2093 }
 0x376   :  { %v364_v48 = vsel %vm197_vm2, %v2094_v47, 0.0 }
 0x377   :  { %365 = vadd.xlane.f32.xlu0 %v364_v48 }
 0x38d   :  { %524 = vrot.lane.b32.xlu0 %v2330_v25, %s2242_s15 }
 0x391   :  { %602 = vrot.lane.b32.xlu0 %v2328_v24, %s2242_s15 }
 0x3fc   :  { %v363_v50 = vpop.xlane.xlu0 %362 }
 0x3fd   :  { %2095 = vrcp.f32 %v363_v50 }
 0x400   :  { %v366_v51 = vpop.xlane.xlu0 %365 }
 0x401   :  { %2097 = vrcp.f32 %v366_v51 }
 0x404   :  { %v525_v56 = vpop.permute.xlu0 %524 }
 0x408   :  { %v603_v58 = vpop.permute.xlu0 %602 }
 0x40a   :  { %v2096_v52 = vpop.eup %2095 }
 0x40b   :  { %v369_v53 = vmul.f32 %v2096_v52, %v2092_v45 }
 0x40d   :  { %1980 = vmatmul.mubr.msk.f32.vlgmr.msra.gmra.mxu0 %vm197_vm2, %v369_v53 }
 0x40e   :  { %v2098_v55 = vpop.eup %2097  ;;  %1988 = vmatpush3.xpose.msk.msra.mxu0 %vm197_vm2, %v527_v54  ;;  %1989 = vmatprep.mubr.msk.f32.mxu0 %vm2238_vm1, %v2237_v23 }
 0x40f   :  { %v370_v57 = vmul.f32 %v2098_v55, %v2094_v47  ;;  %1997 = vmatprep.subr.mxu0 %v2237_v23 }
 0x411   :  { %1985 = vmatmul.mubr.msk.f32.vlgmr.msra.gmra.mxu1 %vm197_vm2, %v370_v57  ;;  %1990 = vmatmul.mubr.msk.f32.vlgmr.msra.gmra.mxu0 %vm197_vm2, %v525_v56 }
 0x412   :  { %1993 = vmatpush3.xpose.msk.msra.mxu1 %vm197_vm2, %v605_v49  ;;  %1994 = vmatprep.mubr.msk.f32.mxu1 %vm2238_vm1, %v2237_v23 }
 0x413   :  { %2002 = vmatprep.subr.mxu1 %v2237_v23  ;;  %1999 = vmatprep.mubr.msk.f32.mxu0 %vm2238_vm1, %v2237_v23 }
 0x415   :  { %1995 = vmatmul.mubr.msk.f32.vlgmr.msra.gmra.mxu1 %vm197_vm2, %v603_v58 }
 0x416   :  { %2004 = vmatprep.mubr.msk.f32.mxu1 %vm2238_vm1, %v2237_v23 }
 0x4cd   :  { %v443_v59 = vpop.f32.mrf.mxu0 }
 0x4cf   :  { %v1981_v60 = vpop.f32.mrf.mxu0 }
 0x4d1   :  { %v519_v62 = vpop.f32.mrf.mxu1  ;;  %v598_v63 = vpop.f32.mrf.mxu0 }
 0x4d2   :  { %v599_v2 = vadd.f32 %v598_v63, %v191_v61 }
 0x4d3   :  { %v1986_v3 = vpop.f32.mrf.mxu1  ;;  %v1991_v4 = vpop.f32.mrf.mxu0 }
 0x4d4   :  { %v680_v5 = vsel %vm197_vm2, %v599_v2, -inf }
 0x4d5   :  { %681 = vmax.xlane.f32.xlu0 %v680_v5  ;;  %v676_v6 = vpop.f32.mrf.mxu1 }
 0x4d6   :  { %v677_v7 = vadd.f32 %v676_v6, %v191_v61 }
 0x4d7   :  { %v1996_v8 = vpop.f32.mrf.mxu1 }
 0x4d8   :  { %v683_v9 = vsel %vm197_vm2, %v677_v7, -inf }
 0x4d9   :  { %684 = vmax.xlane.f32.xlu1 %v683_v9 }
 0x4ea   :  { %778 = vrot.lane.b32.xlu1 %v2328_v24, %s2243_s16 }
 0x4ee   :  { %1020 = vrot.lane.b32.xlu1 %v2330_v25, %s2244_s17 }
 0x4f2   :  { %1098 = vrot.lane.b32.xlu1 %v2328_v24, %s2244_s17 }
 0x4f6   :  { %1096 = vrot.lane.b32.xlu1 %v2328_v24, %s2245_s18 }
 0x55e   :  { %v682_v10 = vpop.xlane.xlu0 %681 }
 0x55f   :  { %v686_v11 = vsub.f32 %v599_v2, %v682_v10 }
 0x561   :  { %v688_v12 = vmul.f32 1.442695, %v686_v11 }
 0x562   :  { %v685_v13 = vpop.xlane.xlu1 %684 }
 0x563   :  { %2099 = vpow2.f32 %v688_v12  ;;  %v687_v14 = vsub.f32 %v677_v7, %v685_v13 }
 0x565   :  { %v690_v15 = vmul.f32 1.442695, %v687_v14  ;;  %v1349_v14 = vld [vmem:[#allocation7 + $0x10] sm:$0xff] }
 0x566   :  { %v779_v16 = vpop.permute.xlu1 %778 }
 0x567   :  { %2101 = vpow2.f32 %v690_v15  ;;  %2003 = vmatpush3.msra.mxu1 %v779_v16  ;;  %v193_v15 = vld [vmem:[#allocation8 + $0x18] sm:$0xff] }
 0x568   :  { %2012 = vmatprep.subr.mxu1 %v523_v21 }
 0x56a   :  { %v1021_v30 = vpop.permute.xlu1 %1020 }
 0x56e   :  { %v1099_v33 = vpop.permute.xlu1 %1098 }
 0x570   :  { %v2100_v17 = vpop.eup %2099 }
 0x571   :  { %v692_v18 = vsel %vm197_vm2, %v2100_v17, 0.0 }
 0x572   :  { %693 = vadd.xlane.f32.xlu0 %v692_v18  ;;  %v1097_v34 = vpop.permute.xlu1 %1096 }
 0x574   :  { %v2102_v19 = vpop.eup %2101 }
 0x575   :  { %v695_v20 = vsel %vm197_vm2, %v2102_v19, 0.0 }
 0x576   :  { %696 = vadd.xlane.f32.xlu0 %v695_v20 }
 0x58c   :  { %702 = vrot.lane.b32.xlu0 %v2330_v25, %s2243_s16 }
 0x590   :  { %1018 = vrot.lane.b32.xlu0 %v2330_v25, %s2245_s18 }
 0x5fb   :  { %v694_v22 = vpop.xlane.xlu0 %693 }
 0x5fc   :  { %2103 = vrcp.f32 %v694_v22 }
 0x5ff   :  { %v697_v26 = vpop.xlane.xlu0 %696 }
 0x600   :  { %2105 = vrcp.f32 %v697_v26 }
 0x603   :  { %v703_v27 = vpop.permute.xlu0 %702 }
 0x604   :  { %1998 = vmatpush3.msra.mxu0 %v703_v27 }
 0x605   :  { %2007 = vmatprep.subr.mxu0 %v855_v35 }
 0x607   :  { %v1019_v40 = vpop.permute.xlu0 %1018 }
 0x609   :  { %v2104_v28 = vpop.eup %2103 }
 0x60a   :  { %v700_v29 = vmul.f32 %v2104_v28, %v2100_v17 }
 0x60c   :  { %2000 = vmatmul.mubr.msk.f32.vlgmr.msra.gmra.mxu0 %vm197_vm2, %v700_v29 }
 0x60d   :  { %v2106_v31 = vpop.eup %2105  ;;  %2008 = vmatpush3.msra.mxu0 %v855_v35 }
 0x60e   :  { %v701_v32 = vmul.f32 %v2106_v31, %v2102_v19  ;;  %2017 = vmatprep.subr.mxu0 %v2237_v23 }
 0x610   :  { %2005 = vmatmul.mubr.msk.f32.vlgmr.msra.gmra.mxu1 %vm197_vm2, %v701_v32 }
 0x611   :  { %2014 = vmatprep.mubr.msk.f32.mxu1 %vm197_vm2, %v443_v59  ;;  %2013 = vmatpush3.msra.mxu1 %v523_v21 }
 0x612   :  { %2022 = vmatprep.subr.mxu1 %v2237_v23 }
 0x614   :  { %2015 = vmatmul.mubr.msk.f32.vlgmr.msra.gmra.mxu1 %vm197_vm2, %v519_v62 }
 0x615   :  { %2023 = vmatpush3.xpose.msk.msra.mxu1 %vm197_vm2, %v1099_v33  ;;  %2024 = vmatprep.mubr.msk.f32.mxu1 %vm2238_vm1, %v2237_v23 }
 0x616   :  { %2032 = vmatprep.subr.mxu1 %v2237_v23 }
 0x618   :  { %2025 = vmatmul.mubr.msk.f32.vlgmr.msra.gmra.mxu1 %vm197_vm2, %v1097_v34 }
 0x619   :  { %2034 = vmatprep.mubr.msk.f32.mxu1 %vm2238_vm1, %v2237_v23 }
 0x6cc   :  { %v774_v36 = vpop.f32.mrf.mxu0 }
 0x6cd   :  { %2009 = vmatprep.mubr.msk.f32.mxu0 %vm197_vm2, %v774_v36 }
 0x6ce   :  { %v2001_v37 = vpop.f32.mrf.mxu0 }
 0x6d0   :  { %v850_v38 = vpop.f32.mrf.mxu1 }
 0x6d1   :  { %2010 = vmatmul.mubr.msk.f32.vlgmr.msra.gmra.mxu0 %vm197_vm2, %v850_v38 }
 0x6d2   :  { %2018 = vmatpush3.xpose.msk.msra.mxu0 %vm197_vm2, %v1021_v30  ;;  %v2006_v39 = vpop.f32.mrf.mxu1  ;;  %2019 = vmatprep.mubr.msk.f32.mxu0 %vm2238_vm1, %v2237_v23 }
 0x6d3   :  { %2027 = vmatprep.subr.mxu0 %v2237_v23 }
 0x6d4   :  { %v2403_v41 = vpop.f32.mrf.mxu1 }
 0x6d5   :  { %2020 = vmatmul.mubr.msk.f32.vlgmr.msra.gmra.mxu0 %vm197_vm2, %v1019_v40 }
 0x6d6   :  { %v2406_v42 = vpop.f32.mrf.mxu1  ;;  %2029 = vmatprep.mubr.msk.f32.mxu0 %vm2238_vm1, %v2237_v23 }
 0x6d8   :  { %v1170_v44 = vpop.f32.mrf.mxu1 }
 0x6d9   :  { %v1171_v45 = vadd.f32 %v1170_v44, %v192_v43 }
 0x6da   :  { %v2026_v46 = vpop.f32.mrf.mxu1 }
 0x6db   :  { %v1177_v47 = vsel %vm197_vm2, %v1171_v45, -inf }
 0x6dc   :  { %1178 = vmax.xlane.f32.xlu1 %v1177_v47 }
 0x6ed   :  { %1272 = vrot.lane.b32.xlu1 %v2328_v24, %s2246_s19 }
 0x6f1   :  { %1435 = vrot.lane.b32.xlu1 %v2330_v25, %s2247_s20 }
 0x6f5   :  { %1513 = vrot.lane.b32.xlu1 %v2328_v24, %s2247_s20 }
 0x6f9   :  { %1511 = vrot.lane.b32.xlu1 %v2328_v24, %s2248_s21 }
 0x765   :  { %v1179_v48 = vpop.xlane.xlu1 %1178 }
 0x766   :  { %v1181_v50 = vsub.f32 %v1171_v45, %v1179_v48 }
 0x768   :  { %v1184_v51 = vmul.f32 1.442695, %v1181_v50 }
 0x769   :  { %v1273_v49 = vpop.permute.xlu1 %1272 }
 0x76a   :  { %2033 = vmatpush3.msra.mxu1 %v1273_v49  ;;  %2107 = vpow2.f32 %v1184_v51 }
 0x76b   :  { %2042 = vmatprep.subr.mxu1 %v2237_v23 }
 0x76d   :  { %v1436_v6 = vpop.permute.xlu1 %1435 }
 0x771   :  { %v1514_v20 = vpop.permute.xlu1 %1513 }
 0x775   :  { %v1512_v26 = vpop.permute.xlu1 %1511 }
 0x777   :  { %v2108_v58 = vpop.eup %2107 }
 0x778   :  { %v1189_v59 = vsel %vm197_vm2, %v2108_v58, 0.0 }
 0x791   :  { %v2418_v52 = vpop.f32.mrf.mxu0 }
 0x792   :  { %v1015_v32 = vadd.f32 %v2403_v41, %v2418_v52 }
 0x793   :  { %v2420_v53 = vpop.f32.mrf.mxu0 }
 0x794   :  { %v1010_v34 = vadd.f32 %v2406_v42, %v2420_v53  ;;  %v1764_v53 = vld [vmem:[#allocation7 + $0x18] sm:$0xff] }
 0x795   :  { %v1092_v54 = vpop.f32.mrf.mxu0 }
 0x796   :  { %v1093_v55 = vadd.f32 %v1092_v54, %v192_v43 }
 0x797   :  { %v2021_v56 = vpop.f32.mrf.mxu0 }
 0x798   :  { %v1174_v57 = vsel %vm197_vm2, %v1093_v55, -inf }
 0x799   :  { %1175 = vmax.xlane.f32.xlu0 %v1174_v57 }
 0x79d   :  { %1190 = vadd.xlane.f32.xlu0 %v1189_v59 }
 0x822   :  { %v1176_v60 = vpop.xlane.xlu0 %1175 }
 0x823   :  { %v1180_v61 = vsub.f32 %v1093_v55, %v1176_v60 }
 0x825   :  { %v1182_v62 = vmul.f32 1.442695, %v1180_v61 }
 0x826   :  { %v1191_v63 = vpop.xlane.xlu0 %1190 }
 0x827   :  { %2109 = vpow2.f32 %v1182_v62 }
 0x828   :  { %2111 = vrcp.f32 %v1191_v63 }
 0x834   :  { %v2110_v2 = vpop.eup %2109 }
 0x835   :  { %v2112_v3 = vpop.eup %2111  ;;  %v1186_v4 = vsel %vm197_vm2, %v2110_v2, 0.0 }
 0x836   :  { %1187 = vadd.xlane.f32.xlu0 %v1186_v4  ;;  %v1195_v5 = vmul.f32 %v2112_v3, %v2108_v58 }
 0x838   :  { %2035 = vmatmul.mubr.msk.f32.vlgmr.msra.gmra.mxu1 %vm197_vm2, %v1195_v5 }
 0x839   :  { %2043 = vmatpush3.xpose.msk.msra.mxu1 %vm197_vm2, %v1436_v6  ;;  %2044 = vmatprep.mubr.msk.f32.mxu1 %vm2238_vm1, %v2237_v23 }
 0x83a   :  { %2052 = vmatprep.subr.mxu1 %v2237_v23 }
 0x84c   :  { %1196 = vrot.lane.b32.xlu0 %v2330_v25, %s2246_s19 }
 0x850   :  { %1433 = vrot.lane.b32.xlu0 %v2330_v25, %s2248_s21 }
 0x8bf   :  { %v1188_v7 = vpop.xlane.xlu0 %1187 }
 0x8c0   :  { %2113 = vrcp.f32 %v1188_v7 }
 0x8c3   :  { %v1197_v8 = vpop.permute.xlu0 %1196 }
 0x8c4   :  { %2028 = vmatpush3.msra.mxu0 %v1197_v8 }
 0x8c5   :  { %2037 = vmatprep.subr.mxu0 %v1349_v14 }
 0x8c7   :  { %v1434_v9 = vpop.permute.xlu0 %1433 }
 0x8c8   :  { %2045 = vmatmul.mubr.msk.f32.vlgmr.msra.gmra.mxu1 %vm197_vm2, %v1434_v9 }
 0x8c9   :  { %2054 = vmatprep.mubr.msk.f32.mxu1 %vm2238_vm1, %v2237_v23 }
 0x8cd   :  { %v2114_v10 = vpop.eup %2113 }
 0x8ce   :  { %v1194_v11 = vmul.f32 %v2114_v10, %v2110_v2 }
 0x8d0   :  { %2030 = vmatmul.mubr.msk.f32.vlgmr.msra.gmra.mxu0 %vm197_vm2, %v1194_v11 }
 0x8d1   :  { %2038 = vmatpush3.msra.mxu0 %v1349_v14 }
 0x8d2   :  { %2047 = vmatprep.subr.mxu0 %v2237_v23 }
 0x8f8   :  { %v1344_v12 = vpop.f32.mrf.mxu1 }
 0x8fa   :  { %v2036_v13 = vpop.f32.mrf.mxu1 }
 0x988   :  { %v1507_v16 = vpop.f32.mrf.mxu1 }
 0x989   :  { %v1508_v17 = vadd.f32 %v1507_v16, %v193_v15 }
 0x98a   :  { %v2046_v18 = vpop.f32.mrf.mxu1 }
 0x98b   :  { %v1589_v19 = vsel %vm197_vm2, %v1508_v17, -inf }
 0x98c   :  { %1590 = vmax.xlane.f32.xlu0 %v1589_v19 }
 0x990   :  { %v1268_v21 = vpop.f32.mrf.mxu0 }
 0x991   :  { %2039 = vmatprep.mubr.msk.f32.mxu0 %vm197_vm2, %v1268_v21 }
 0x992   :  { %v2031_v22 = vpop.f32.mrf.mxu0  ;;  %2040 = vmatmul.mubr.msk.f32.vlgmr.msra.gmra.mxu0 %vm197_vm2, %v1344_v12 }
 0x993   :  { %2048 = vmatpush3.xpose.msk.msra.mxu0 %vm197_vm2, %v1514_v20  ;;  %2049 = vmatprep.mubr.msk.f32.mxu0 %vm2238_vm1, %v2237_v23 }
 0x994   :  { %2057 = vmatprep.subr.mxu0 %v2237_v23 }
 0x996   :  { %2050 = vmatmul.mubr.msk.f32.vlgmr.msra.gmra.mxu0 %vm197_vm2, %v1512_v26 }
 0x997   :  { %2059 = vmatprep.mubr.msk.f32.mxu0 %vm2238_vm1, %v2237_v23 }
 0xa15   :  { %v1591_v27 = vpop.xlane.xlu0 %1590 }
 0xa16   :  { %v1595_v28 = vsub.f32 %v1508_v17, %v1591_v27 }
 0xa18   :  { %v1597_v29 = vmul.f32 1.442695, %v1595_v28 }
 0xa1a   :  { %2115 = vpow2.f32 %v1597_v29 }
 0xa27   :  { %v2116_v30 = vpop.eup %2115 }
 0xa28   :  { %v1601_v31 = vsel %vm197_vm2, %v2116_v30, 0.0 }
 0xa29   :  { %1602 = vadd.xlane.f32.xlu0 %v1601_v31 }
 0xa52   :  { %v2041_v33 = vpop.f32.mrf.mxu0 }
 0xa53   :  { %v1432_v35 = vadd.f32 %v2041_v33, %v1015_v32 }
 0xa54   :  { %v1422_v36 = vpop.f32.mrf.mxu0 }
 0xa55   :  { %v1431_v37 = vadd.f32 %v1422_v36, %v1010_v34 }
 0xa56   :  { %v1585_v38 = vpop.f32.mrf.mxu0 }
 0xa57   :  { %v1586_v23 = vadd.f32 %v1585_v38, %v193_v15 }
 0xa58   :  { %v2051_v39 = vpop.f32.mrf.mxu0 }
 0xa59   :  { %v1592_v40 = vsel %vm197_vm2, %v1586_v23, -inf }
 0xa5a   :  { %1593 = vmax.xlane.f32.xlu1 %v1592_v40 }
 0xa6b   :  { %1687 = vrot.lane.b32.xlu1 %v2328_v24, %s2249_s22 }
 0xab2   :  { %v1603_v47 = vpop.xlane.xlu0 %1602 }
 0xae3   :  { %v1594_v43 = vpop.xlane.xlu1 %1593 }
 0xae4   :  { %v1596_v44 = vsub.f32 %v1586_v23, %v1594_v43 }
 0xae6   :  { %v1599_v45 = vmul.f32 1.442695, %v1596_v44 }
 0xae7   :  { %v1688_v41 = vpop.permute.xlu1 %1687 }
 0xae8   :  { %2117 = vpow2.f32 %v1599_v45  ;;  %2058 = vmatpush3.msra.mxu0 %v1688_v41 }
 0xae9   :  { %2119 = vrcp.f32 %v1603_v47 }
 0xaf5   :  { %v2118_v46 = vpop.eup %2117 }
 0xaf6   :  { %v1604_v42 = vsel %vm197_vm2, %v2118_v46, 0.0  ;;  %v2120_v49 = vpop.eup %2119 }
 0xaf7   :  { %1605 = vadd.xlane.f32.xlu0 %v1604_v42  ;;  %v1609_v51 = vmul.f32 %v2120_v49, %v2116_v30 }
 0xb0d   :  { %1611 = vrot.lane.b32.xlu0 %v2330_v25, %s2249_s22 }
 0xb80   :  { %v1606_v48 = vpop.xlane.xlu0 %1605 }
 0xb81   :  { %2121 = vrcp.f32 %v1606_v48 }
 0xb84   :  { %v1612_v50 = vpop.permute.xlu0 %1611 }
 0xb85   :  { %2053 = vmatpush3.msra.mxu1 %v1612_v50 }
 0xb86   :  { %2055 = vmatmul.mubr.msk.f32.vlgmr.msra.gmra.mxu1 %vm197_vm2, %v1609_v51  ;;  %2062 = vmatprep.subr.mxu1 %v1764_v53 }
 0xb87   :  { %2063 = vmatpush3.msra.mxu1 %v1764_v53 }
 0xb8e   :  { %v2122_v24 = vpop.eup %2121 }
 0xb8f   :  { %v1610_v52 = vmul.f32 %v2122_v24, %v2118_v46 }
 0xb91   :  { %2060 = vmatmul.mubr.msk.f32.vlgmr.msra.gmra.mxu0 %vm197_vm2, %v1610_v52 }
 0xc46   :  { %v1683_v54 = vpop.f32.mrf.mxu1 }
 0xc47   :  { %2064 = vmatprep.mubr.msk.f32.mxu1 %vm197_vm2, %v1683_v54 }
 0xc48   :  { %v2056_v25 = vpop.f32.mrf.mxu1 }
 0xc51   :  { %v1759_v55 = vpop.f32.mrf.mxu0 }
 0xc52   :  { %2065 = vmatmul.mubr.msk.f32.vlgmr.msra.gmra.mxu1 %vm197_vm2, %v1759_v55 }
 0xc53   :  { %v2061_v56 = vpop.f32.mrf.mxu0 }
 0xd12   :  { %v2066_v57 = vpop.f32.mrf.mxu1 }
 0xd13   :  { %v1847_v58 = vadd.f32 %v2066_v57, %v1432_v35 }
 0xd14   :  { %v1837_v59 = vpop.f32.mrf.mxu1 }
 0xd15   :  { %v1849_v60 = vadd.f32 %v1847_v58, %v2307_v1  ;;  %v1846_v61 = vadd.f32 %v1837_v59, %v1431_v37 }
 0xd17   :  { %1851 = vst.msk [vmem:[#allocation10 + $0x8] sm:$0xff] %vm80_vm0, %v1849_v60  ;;  %v1848_v62 = vadd.f32 %v1846_v61, %v2305_v0 }
 0xd19   :  { %1850 = vst.msk [vmem:[#allocation10] sm:$0xff] %vm80_vm0, %v1848_v62 }
 0xd1a   :  { %2214 = shalt.err (!%p2211_p10)
}
 0xd1b   :  { %1863 = dma.vmem_to_hbm [thread:$0]  %s1858_s26, 256, %s2477_s5, [#allocation4], %s2233_s23, %s2233_s23, %s2234_s24  }
 0xd1c   :  { %2229 = dma.done.wait [#allocation4], 256  }
 0xd1d   :  { %2230 = vsyncadd [#allocation4], 4294967040 }
 0xd1e   :  { %1867 = vsyncpa [#allocation3], 1 }
 0xd1f   :  { %1868 = vsyncpa [#allocation6], 1 }
 0xd20   :  { %1869 = vsyncpa [#allocation9], 1 }
 0xd21   :  { %1870 = vsyncpa [#allocation4], 1 }

</bundles_post_ra>
